<compile_context>
chip_gen: v7x
topology: tpu7x:2x2x1
jax: 0.10.0
libtpu: 0.0.40
codegen_flags: <defaults>
</compile_context>

<pallas_src>
import functools

import jax
import jax.numpy as jnp
from jax.experimental import pallas as pl
from jax.experimental.pallas import tpu as pltpu


def _round_up(v, m):
    return ((v + m - 1) // m) * m


def _padded_rows(n):
    """Pad the node count so the row tile TM divides it exactly.

    TM=512 for large graphs (tile-size sweep: ~85% of HBM roofline at 512),
    TM=n_pad (single grid step) for small ones."""
    n_pad = _round_up(n, 128)
    if n_pad > 512:
        n_pad = _round_up(n_pad, 512)
        return n_pad, 512
    return n_pad, n_pad


def _vmem_limit_bytes():
    """Generation-aware VMEM budget: ~80% of physical capacity
    (~102 MiB on v5e/v6e's 128 MiB, ~51 MiB on v7x's 64 MiB)."""
    try:
        cap = int(pltpu.get_tpu_info().vmem_capacity_bytes)
    except Exception:  # query unavailable -> assume the smallest part (v7x)
        cap = 64 * 1024 * 1024
    return int(cap * 0.8)


def _graph_conv_kernel(adj_ref, h_ref, w_ref, b_ref, *rest,
                       tm, relu, has_mask):
    """One GraphConv layer for one row tile of TM nodes.

    adj_ref : (TM, N_pad)    bf16   incoming-edge counts for this tile's rows
    h_ref   : (N_pad, F_in)  bf16   full node features (resident)
    w_ref   : (2*F_in, F_out) bf16  vstack([W_root, W_neigh])
    b_ref   : (1, F_out)     f32
    mask_ref: (TM, F_out)    bf16   dropout mask pre-scaled to {0, 1/(1-p)} (optional)
    out_ref : (TM, F_out)
    hcat_ref: (TM, 2*F_in)   bf16   VMEM scratch holding [h_rows | adj@h]
    """
    if has_mask:
        mask_ref, out_ref, hcat_ref = rest
    else:
        mask_ref = None
        out_ref, hcat_ref = rest

    f_in = h_ref.shape[1]
    row0 = pl.multiple_of(pl.program_id(0) * tm, tm)

    # Root half: this tile's own rows of h.
    hcat_ref[:, :f_in] = h_ref[pl.ds(row0, tm), :]
    # Neighbor half: sum of incoming-neighbor features = adj row-tile @ full h.
    agg = jnp.dot(adj_ref[...], h_ref[...], preferred_element_type=jnp.float32)
    hcat_ref[:, f_in:] = agg.astype(jnp.bfloat16)

    # Fused root+neigh projection: single K = 2*F_in matmul against
    # vstack([W_root, W_neigh]) (fills the 256-deep MXU on v6e/v7x).
    out = jnp.dot(hcat_ref[...], w_ref[...], preferred_element_type=jnp.float32)
    out = out + b_ref[...]
    if relu:
        out = jnp.maximum(out, 0.0)
    if has_mask:
        out = out * mask_ref[...].astype(jnp.float32)   # inverted dropout
    out_ref[...] = out.astype(out_ref.dtype)


def _graph_conv_layer(adj, h, w_stack, bias, mask, *, tm, relu, out_dtype):
    n_pad = adj.shape[0]
    f_in = h.shape[1]
    f_out = w_stack.shape[1]
    grid = (n_pad // tm,)
    has_mask = mask is not None

    in_specs = [
        pl.BlockSpec((tm, n_pad), lambda i: (i, 0)),         # adj row tile
        pl.BlockSpec((n_pad, f_in), lambda i: (0, 0)),       # full h (resident)
        pl.BlockSpec((2 * f_in, f_out), lambda i: (0, 0)),   # stacked weights
        pl.BlockSpec((1, f_out), lambda i: (0, 0)),          # bias
    ]
    inputs = [adj, h, w_stack, bias]
    if has_mask:
        in_specs.append(pl.BlockSpec((tm, f_out), lambda i: (i, 0)))
        inputs.append(mask)

    flops = 2 * n_pad * n_pad * f_in + 2 * n_pad * (2 * f_in) * f_out
    bytes_accessed = (sum(int(a.size) * a.dtype.itemsize for a in inputs)
                      + n_pad * f_out * jnp.dtype(out_dtype).itemsize)

    kernel = functools.partial(_graph_conv_kernel, tm=tm, relu=relu,
                               has_mask=has_mask)

    return pl.pallas_call(
        kernel,
        out_shape=jax.ShapeDtypeStruct((n_pad, f_out), out_dtype),
        grid=grid,
        in_specs=in_specs,
        out_specs=pl.BlockSpec((tm, f_out), lambda i: (i, 0)),
        scratch_shapes=[pltpu.VMEM((tm, 2 * f_in), jnp.bfloat16)],
        compiler_params=pltpu.CompilerParams(
            # Row tiles are independent -> shard across v7x's two TensorCores.
            dimension_semantics=("parallel",),
            vmem_limit_bytes=_vmem_limit_bytes()),
        cost_estimate=pl.CostEstimate(
            flops=flops, transcendentals=0, bytes_accessed=bytes_accessed),
    )(*inputs)


def build_padded_adjacency(edge_index, num_nodes, n_pad):
    """Dense padded adjacency A[dst, src] += 1 (incoming edges), bf16.

    Build this ONCE per graph and reuse across forward calls (it is the
    asymptotically dominant cost if rebuilt per call).  bf16 holds edge
    counts exactly up to 256 parallel edges per node pair."""
    del num_nodes  # rows/cols beyond the real nodes are simply never touched
    src, dst = edge_index[0], edge_index[1]
    adj = jnp.zeros((n_pad, n_pad), jnp.float32).at[dst, src].add(1.0)
    return adj.astype(jnp.bfloat16)


def graphnn_forward(x, edge_index, params, *, dropout_rate=0.5, training=True,
                    seed=0, adj_pad=None):
    """x: [N, input_dim] f32, edge_index: [2, E] int32. Returns flat [N*out_dim] f32.

    Pass a cached `adj_pad` (from build_padded_adjacency) to avoid rebuilding
    the dense adjacency on every call."""
    n, input_dim = x.shape
    hidden_dim = params["w1_root"].shape[1]
    output_dim = params["w3_root"].shape[1]

    n_pad, tm = _padded_rows(n)
    in_pad = _round_up(input_dim, 128)
    hid_pad = _round_up(hidden_dim, 128)
    out_pad = _round_up(output_dim, 128)

    if adj_pad is None:
        adj_pad = build_padded_adjacency(edge_index, n, n_pad)

    xp = jnp.zeros((n_pad, in_pad), jnp.bfloat16)
    xp = xp.at[:n, :input_dim].set(x.astype(jnp.bfloat16))

    def stack_w(wr, wn, rows, cols):
        # vstack([W_root, W_neigh]) padded to (2*rows, cols), bf16.
        w = jnp.zeros((2 * rows, cols), jnp.bfloat16)
        w = w.at[:wr.shape[0], :wr.shape[1]].set(wr.astype(jnp.bfloat16))
        w = w.at[rows:rows + wn.shape[0], :wn.shape[1]].set(
            wn.astype(jnp.bfloat16))
        return w

    def pad_b(b, cols):
        out = jnp.zeros((1, cols), jnp.float32)
        return out.at[:, :b.shape[1]].set(b.astype(jnp.float32))

    w1 = stack_w(params["w1_root"], params["w1_neigh"], in_pad, hid_pad)
    b1 = pad_b(params["b1"], hid_pad)
    w2 = stack_w(params["w2_root"], params["w2_neigh"], hid_pad, hid_pad)
    b2 = pad_b(params["b2"], hid_pad)
    w3 = stack_w(params["w3_root"], params["w3_neigh"], hid_pad, out_pad)
    b3 = pad_b(params["b3"], out_pad)

    # Dropout keep-masks, host-side jax.random, pre-scaled to {0, 1/(1-p)}.
    use_dropout = training and dropout_rate > 0.0
    if use_dropout:
        scale = 1.0 / (1.0 - dropout_rate) if dropout_rate < 1.0 else 0.0
        key = jax.random.PRNGKey(seed)
        k1, k2 = jax.random.split(key)
        m1 = ((jax.random.uniform(k1, (n_pad, hid_pad)) >= dropout_rate)
              .astype(jnp.float32) * scale).astype(jnp.bfloat16)
        m2 = ((jax.random.uniform(k2, (n_pad, hid_pad)) >= dropout_rate)
              .astype(jnp.float32) * scale).astype(jnp.bfloat16)
    else:
        m1 = m2 = None   # inference: no mask inputs, no dead DMA

    # layer 1: conv -> relu -> dropout        (bf16 intermediate)
    h = _graph_conv_layer(adj_pad, xp, w1, b1, m1,
                          tm=tm, relu=True, out_dtype=jnp.bfloat16)
    # layer 2: conv -> relu -> dropout        (bf16 intermediate)
    h = _graph_conv_layer(adj_pad, h, w2, b2, m2,
                          tm=tm, relu=True, out_dtype=jnp.bfloat16)
    # layer 3: conv only                      (f32, lane-dense store)
    out = _graph_conv_layer(adj_pad, h, w3, b3, None,
                            tm=tm, relu=False, out_dtype=jnp.float32)

    return out[:n, :output_dim].reshape(-1)   # x.view(-1)


def init_params(key, input_dim, hidden_dim, output_dim):
    """Deterministic synthetic init. Weights stored as [in, out] so the kernel
    computes h @ W directly (equivalent to torch's h @ W.T with W [out, in])."""
    ks = jax.random.split(key, 6)

    def lin(k, fan_in, fan_out):
        scale = 1.0 / jnp.sqrt(jnp.float32(fan_in))
        return jax.random.uniform(k, (fan_in, fan_out), jnp.float32,
                                  -scale, scale)

    return {
        "w1_root": lin(ks[0], input_dim, hidden_dim),
        "w1_neigh": lin(ks[1], input_dim, hidden_dim),
        "b1": jnp.zeros((1, hidden_dim), jnp.float32),
        "w2_root": lin(ks[2], hidden_dim, hidden_dim),
        "w2_neigh": lin(ks[3], hidden_dim, hidden_dim),
        "b2": jnp.zeros((1, hidden_dim), jnp.float32),
        "w3_root": lin(ks[4], hidden_dim, output_dim),
        "w3_neigh": lin(ks[5], hidden_dim, output_dim),
        "b3": jnp.zeros((1, output_dim), jnp.float32),
    }


if __name__ == "__main__":
    key = jax.random.PRNGKey(0)
    k_x, k_p = jax.random.split(key)

    N, INPUT_DIM, HIDDEN_DIM, OUTPUT_DIM = 16, 8, 32, 4

    # node features
    x = jax.random.normal(k_x, (N, INPUT_DIM), jnp.float32)

    # deterministic ring graph (bidirectional): E = 2*N edges
    idx = jnp.arange(N, dtype=jnp.int32)
    src = jnp.concatenate([idx, (idx + 1) % N])
    dst = jnp.concatenate([(idx + 1) % N, idx])
    edge_index = jnp.stack([src, dst], axis=0)   # [2, 32]

    params = init_params(k_p, INPUT_DIM, HIDDEN_DIM, OUTPUT_DIM)

    # Build the dense padded adjacency ONCE (cacheable across forward calls).
    n_pad, _ = _padded_rows(N)
    adj_pad = build_padded_adjacency(edge_index, N, n_pad)

    out = graphnn_forward(x, edge_index, params,
                          dropout_rate=0.5, training=True, seed=42,
                          adj_pad=adj_pad)
    jax.block_until_ready(out)

    assert out.shape == (N * OUTPUT_DIM,)
    assert jnp.all(jnp.isfinite(out))
    print("KERNEL_OK")
</pallas_src>

<mosaic_0001>
module attributes {stable_mosaic.version = 11 : i64} {
  func.func @_graph_conv_kernel(%arg0: i32, %arg1: memref<128x128xbf16, #tpu.memory_space<vmem>>, %arg2: memref<128x128xbf16, #tpu.memory_space<vmem>>, %arg3: memref<256x128xbf16, #tpu.memory_space<vmem>>, %arg4: memref<1x128xf32, #tpu.memory_space<vmem>>, %arg5: memref<128x128xbf16, #tpu.memory_space<vmem>>, %arg6: memref<128x128xbf16, #tpu.memory_space<vmem>>, %arg7: memref<128x256xbf16, #tpu.memory_space<vmem>>) attributes {dimension_semantics = [#tpu.dimension_semantics<parallel>], iteration_bounds = array<i64: 1>, scalar_prefetch = 0 : i64, scratch_operands = 1 : i64, tpu.core_type = #tpu.core_type<tc>, window_params = [{transform_indices = @transform_0, window_bounds = array<i64: 128, 128>}, {pipeline_mode = #tpu.pipeline_mode<synchronous>, transform_indices = @transform_1, window_bounds = array<i64: 128, 128>}, {pipeline_mode = #tpu.pipeline_mode<synchronous>, transform_indices = @transform_2, window_bounds = array<i64: 256, 128>}, {pipeline_mode = #tpu.pipeline_mode<synchronous>, transform_indices = @transform_3, window_bounds = array<i64: 1, 128>}, {transform_indices = @transform_4, window_bounds = array<i64: 128, 128>}, {transform_indices = @transform_5, window_bounds = array<i64: 128, 128>}]} {
    %c128_i32 = arith.constant 128 : i32
    %0 = arith.muli %arg0, %c128_i32 : i32
    %1 = tpu.assume_multiple %0, 128 : i32
    %2 = arith.index_cast %1 : i32 to index
    %c0 = arith.constant 0 : index
    %3 = vector.load %arg2[%2, %c0] : memref<128x128xbf16, #tpu.memory_space<vmem>>, vector<128x128xbf16>
    %c0_0 = arith.constant 0 : index
    %c0_1 = arith.constant 0 : index
    %4 = vector.load %arg7[%c0_0, %c0_1] : memref<128x256xbf16, #tpu.memory_space<vmem>>, vector<128x128xbf16>
    tpu.vector_store %arg7[%c0_0, %c0_1], %3 {strides = array<i32>} : memref<128x256xbf16, #tpu.memory_space<vmem>>, vector<128x128xbf16>,
    %c0_2 = arith.constant 0 : index
    %c0_3 = arith.constant 0 : index
    %5 = vector.load %arg1[%c0_2, %c0_3] : memref<128x128xbf16, #tpu.memory_space<vmem>>, vector<128x128xbf16>
    %c0_4 = arith.constant 0 : index
    %c0_5 = arith.constant 0 : index
    %6 = vector.load %arg2[%c0_4, %c0_5] : memref<128x128xbf16, #tpu.memory_space<vmem>>, vector<128x128xbf16>
    %cst = arith.constant dense<0.000000e+00> : vector<128x128xf32>
    %7 = tpu.matmul %5, %6, %cst {dimension_numbers = #tpu.dot_dimension_numbers<[1], [0], [0], [1], [0, 0, 1, 1], [], []>} : vector<128x128xbf16>, vector<128x128xbf16>, vector<128x128xf32> -> vector<128x128xf32>
    %8 = arith.truncf %7 : vector<128x128xf32> to vector<128x128xbf16>
    %c0_6 = arith.constant 0 : index
    %c128 = arith.constant 128 : index
    %9 = vector.load %arg7[%c0_6, %c128] : memref<128x256xbf16, #tpu.memory_space<vmem>>, vector<128x128xbf16>
    tpu.vector_store %arg7[%c0_6, %c128], %8 {strides = array<i32>} : memref<128x256xbf16, #tpu.memory_space<vmem>>, vector<128x128xbf16>,
    %c0_7 = arith.constant 0 : index
    %c0_8 = arith.constant 0 : index
    %10 = vector.load %arg7[%c0_7, %c0_8] : memref<128x256xbf16, #tpu.memory_space<vmem>>, vector<128x256xbf16>
    %c0_9 = arith.constant 0 : index
    %c0_10 = arith.constant 0 : index
    %11 = vector.load %arg3[%c0_9, %c0_10] : memref<256x128xbf16, #tpu.memory_space<vmem>>, vector<256x128xbf16>
    %cst_11 = arith.constant dense<0.000000e+00> : vector<128x128xf32>
    %12 = tpu.matmul %10, %11, %cst_11 {dimension_numbers = #tpu.dot_dimension_numbers<[1], [0], [0], [1], [0, 0, 1, 1], [], []>} : vector<128x256xbf16>, vector<256x128xbf16>, vector<128x128xf32> -> vector<128x128xf32>
    %c0_12 = arith.constant 0 : index
    %c0_13 = arith.constant 0 : index
    %13 = vector.load %arg4[%c0_12, %c0_13] : memref<1x128xf32, #tpu.memory_space<vmem>>, vector<1x128xf32>
    %14 = vector.broadcast %13 : vector<1x128xf32> to vector<128x128xf32>
    %15 = arith.addf %12, %14 : vector<128x128xf32>
    %cst_14 = arith.constant 0.000000e+00 : f32
    %16 = vector.broadcast %cst_14 : f32 to vector<128x128xf32>
    %17 = arith.maximumf %15, %16 : vector<128x128xf32>
    %c0_15 = arith.constant 0 : index
    %c0_16 = arith.constant 0 : index
    %18 = vector.load %arg5[%c0_15, %c0_16] : memref<128x128xbf16, #tpu.memory_space<vmem>>, vector<128x128xbf16>
    %19 = arith.extf %18 : vector<128x128xbf16> to vector<128x128xf32>
    %20 = arith.mulf %17, %19 : vector<128x128xf32>
    %21 = arith.truncf %20 : vector<128x128xf32> to vector<128x128xbf16>
    %c0_17 = arith.constant 0 : index
    %c0_18 = arith.constant 0 : index
    %22 = vector.load %arg6[%c0_17, %c0_18] : memref<128x128xbf16, #tpu.memory_space<vmem>>, vector<128x128xbf16>
    tpu.vector_store %arg6[%c0_17, %c0_18], %21 {strides = array<i32>} : memref<128x128xbf16, #tpu.memory_space<vmem>>, vector<128x128xbf16>,
    return
  }
  func.func @transform_0(%arg0: i32) -> (i32, i32) {
    %c0_i32 = arith.constant 0 : i32
    %c0_i32_0 = arith.constant 0 : i32
    return %arg0, %c0_i32 : i32, i32
  }
  func.func @transform_1(%arg0: i32) -> (i32, i32) {
    %c0_i32 = arith.constant 0 : i32
    %c0_i32_0 = arith.constant 0 : i32
    %c0_i32_1 = arith.constant 0 : i32
    return %c0_i32, %c0_i32_0 : i32, i32
  }
  func.func @transform_2(%arg0: i32) -> (i32, i32) {
    %c0_i32 = arith.constant 0 : i32
    %c0_i32_0 = arith.constant 0 : i32
    %c0_i32_1 = arith.constant 0 : i32
    return %c0_i32, %c0_i32_0 : i32, i32
  }
  func.func @transform_3(%arg0: i32) -> (i32, i32) {
    %c0_i32 = arith.constant 0 : i32
    %c0_i32_0 = arith.constant 0 : i32
    %c0_i32_1 = arith.constant 0 : i32
    return %c0_i32, %c0_i32_0 : i32, i32
  }
  func.func @transform_4(%arg0: i32) -> (i32, i32) {
    %c0_i32 = arith.constant 0 : i32
    %c0_i32_0 = arith.constant 0 : i32
    return %arg0, %c0_i32 : i32, i32
  }
  func.func @transform_5(%arg0: i32) -> (i32, i32) {
    %c0_i32 = arith.constant 0 : i32
    %c0_i32_0 = arith.constant 0 : i32
    return %arg0, %c0_i32 : i32, i32
  }
}

</mosaic_0001>

<bundles_post_ra>
// kernel: tpu_custom_call.1
= control target key start
LH: loop header
LB: loop body
LE: loop exit
PB: predicated region body
PF: predicated region fallthrough
CT: control target
= control target key end

     0   :  { %10 = vsyncpa [#allocation4], 0  ;;  %s1407_s0 = inlined_call_operand.hbm [shape: bf16[128,128], index: 0, kind: input, shape index: {}]   ;;  %s1408_s1 = inlined_call_operand.hbm [shape: bf16[128,128], index: 1, kind: input, shape index: {}]   ;;  %s1409_s2 = inlined_call_operand.hbm [shape: bf16[256,128], index: 2, kind: input, shape index: {}]   ;;  %s1410_s3 = inlined_call_operand.vmem [shape: f32[1,128], index: 3, kind: input, shape index: {}]   ;;  %s1411_s4 = inlined_call_operand.hbm [shape: bf16[128,128], index: 4, kind: input, shape index: {}]   ;;  %s1412_s5 = inlined_call_operand.hbm [shape: bf16[128,128], index: 5, kind: output, shape index: {}]  }
   0x1   :  { %11 = vsyncpa [#allocation7], 0 }
   0x2   :  { %12 = vsyncpa [#allocation10], 0 }
   0x3   :  { %13 = vsyncpa [#allocation5], 0  ;;  %s1260_s18 = smov [#allocation6]   ;;  %s1261_s20 = smov [#allocation3]  }
   0x4   :  { %s31_s19 = sshll.u32 %s1260_s18, 4  ;;  %s19_s21 = sshll.u32 %s1261_s20, 4  ;;  %s32_s19 = int_to_ptr.vmem [resolvable:$true] %s31_s19  ;;  %s1297_s21 = int_to_ptr.vmem [resolvable:$true] %s19_s21 }
   0x5   :  { %s1142_s24 = scalar_lea.hbm %s1408_s1, 1024 }
   0x6   :  { %p1143_p0 = scmp.ne.s32.totalorder %s1408_s1, %s1142_s24  ;;  %p1146_p1 = scmp.lt.u32.totalorder %s1142_s24, %s1408_s1 }
   0x8   :  { %p1148_p2 = pnand %p1146_p1, %p1143_p0 }
   0xa   :  { %1151 = shalt.err (!%p1148_p2)
}
   0xb   :  { %s1152_s29 = scalar_lea.vmem %s32_s19, 1024  ;;  %p1157_p4 = scmp.lt.s32.totalorder %s32_s19, %s32_s19 }
   0xc   :  { %p1153_p3 = scmp.ne.s32.totalorder %s32_s19, %s1152_s29  ;;  %p1158_p5 = scmp.lt.s32.totalorder %s1152_s29, %s1152_s29 }
   0xe   :  { %p1159_p6 = por %p1158_p5, %p1157_p4 }
  0x10   :  { %p1160_p7 = pnand %p1159_p6, %p1153_p3 }
  0x12   :  { %1163 = shalt.err (!%p1160_p7)
}
  0x13   :  { %s1262_s30 = smov 64   ;;  %s1263_s6 = smov 4  }
  0x14   :  { %37 = dma.hbm_to_vmem [thread:$0]  %s1408_s1, 1024, %s32_s19, [#allocation7], %s1262_s30, %s1262_s30, %s1263_s6  }
  0x15   :  { %s1164_s11 = scalar_lea.hbm %s1407_s0, 1024 }
  0x16   :  { %p1165_p8 = scmp.ne.s32.totalorder %s1407_s0, %s1164_s11  ;;  %p1168_p9 = scmp.lt.u32.totalorder %s1164_s11, %s1407_s0 }
  0x18   :  { %p1170_p10 = pnand %p1168_p9, %p1165_p8 }
  0x1a   :  { %1173 = shalt.err (!%p1170_p10)
}
  0x1b   :  { %s1174_s16 = scalar_lea.vmem %s1297_s21, 1024  ;;  %p1179_p12 = scmp.lt.s32.totalorder %s1297_s21, %s1297_s21 }
  0x1c   :  { %p1175_p11 = scmp.ne.s32.totalorder %s1297_s21, %s1174_s16  ;;  %p1180_p13 = scmp.lt.s32.totalorder %s1174_s16, %s1174_s16 }
  0x1e   :  { %p1181_p0 = por %p1180_p13, %p1179_p12 }
  0x20   :  { %p1182_p1 = pnand %p1181_p0, %p1175_p11 }
  0x22   :  { %1185 = shalt.err (!%p1182_p1)
}
  0x23   :  { %25 = dma.hbm_to_vmem [thread:$0]  %s1407_s0, 1024, %s1297_s21, [#allocation4], %s1262_s30, %s1262_s30, %s1263_s6  }
  0x24   :  { %s1264_s18 = smov [#allocation8]   ;;  %s1265_s20 = smov [#allocation9]  }
  0x25   :  { %s43_s19 = sshll.u32 %s1264_s18, 4  ;;  %s57_s22 = sshll.u32 %s1265_s20, 4  ;;  %s44_s19 = int_to_ptr.vmem [resolvable:$true] %s43_s19  ;;  %s1334_s22 = int_to_ptr.vmem [resolvable:$true] %s57_s22 }
  0x26   :  { %s1186_s25 = scalar_lea.hbm %s1409_s2, 2048 }
  0x27   :  { %p1187_p2 = scmp.ne.s32.totalorder %s1409_s2, %s1186_s25  ;;  %p1190_p3 = scmp.lt.u32.totalorder %s1186_s25, %s1409_s2 }
  0x29   :  { %p1192_p4 = pnand %p1190_p3, %p1187_p2 }
  0x2b   :  { %1195 = shalt.err (!%p1192_p4)
}
  0x2c   :  { %s1196_s0 = scalar_lea.vmem %s44_s19, 2048  ;;  %p1201_p6 = scmp.lt.s32.totalorder %s44_s19, %s44_s19 }
  0x2d   :  { %p1197_p5 = scmp.ne.s32.totalorder %s44_s19, %s1196_s0  ;;  %p1202_p7 = scmp.lt.s32.totalorder %s1196_s0, %s1196_s0 }
  0x2f   :  { %p1203_p8 = por %p1202_p7, %p1201_p6 }
  0x31   :  { %p1204_p9 = pnand %p1203_p8, %p1197_p5 }
  0x33   :  { %1207 = shalt.err (!%p1204_p9)
}
  0x34   :  { %49 = dma.hbm_to_vmem [thread:$0]  %s1409_s2, 2048, %s44_s19, [#allocation7], %s1262_s30, %s1262_s30, %s1263_s6  }
  0x35   :  { %s1208_s10 = scalar_lea.hbm %s1411_s4, 1024 }
  0x36   :  { %p1209_p10 = scmp.ne.s32.totalorder %s1411_s4, %s1208_s10  ;;  %p1212_p11 = scmp.lt.u32.totalorder %s1208_s10, %s1411_s4 }
  0x38   :  { %p1214_p12 = pnand %p1212_p11, %p1209_p10 }
  0x3a   :  { %1217 = shalt.err (!%p1214_p12)
}
  0x3b   :  { %s1218_s15 = scalar_lea.vmem %s1334_s22, 1024  ;;  %p1223_p0 = scmp.lt.s32.totalorder %s1334_s22, %s1334_s22 }
  0x3c   :  { %p1219_p13 = scmp.ne.s32.totalorder %s1334_s22, %s1218_s15  ;;  %p1224_p1 = scmp.lt.s32.totalorder %s1218_s15, %s1218_s15 }
  0x3e   :  { %p1225_p2 = por %p1224_p1, %p1223_p0 }
  0x40   :  { %p1226_p3 = pnand %p1225_p2, %p1219_p13 }
  0x42   :  { %1229 = shalt.err (!%p1226_p3)
}
  0x43   :  { %63 = dma.hbm_to_vmem [thread:$0]  %s1411_s4, 1024, %s1334_s22, [#allocation10], %s1262_s30, %s1262_s30, %s1263_s6  }
  0x44   :  { %1252 = dma.done.wait [#allocation4], 1024  }
  0x45   :  { %1253 = vsyncadd [#allocation4], 4294966272 }
  0x46   :  { %1254 = dma.done.wait [#allocation7], 3072  }
  0x47   :  { %1255 = vsyncadd [#allocation7], 4294964224 }
  0x48   :  { %1256 = dma.done.wait [#allocation10], 1024  }
  0x49   :  { %1257 = vsyncadd [#allocation10], 4294966272  ;;  %v1102_v0 = vld [vmem:[#allocation6] sm:$0xff]   ;;  %v1103_v1 = vld [vmem:[#allocation6 + $0x8] sm:$0xff]  }
  0x4a   :  { %1047 = vmatprep.subr.bf16.mxu0 %v1102_v0  ;;  %v1104_v2 = vld [vmem:[#allocation6 + $0x10] sm:$0xff]   ;;  %v1105_v3 = vld [vmem:[#allocation6 + $0x18] sm:$0xff]   ;;  %v1110_v4 = vld [vmem:[#allocation3] sm:$0xff]  }
  0x4b   :  { %1048 = vmatpush3.bf16.msra.mxu0 %v1102_v0  ;;  %1063 = vmatprep.mubr.bf16.mxu0 %v1110_v4  ;;  %v1106_v5 = vld [vmem:[#allocation6 + $0x20] sm:$0xff]   ;;  %v1107_v6 = vld [vmem:[#allocation6 + $0x28] sm:$0xff]   ;;  %v1108_v10 = vld [vmem:[#allocation6 + $0x30] sm:$0xff]  }
  0x4c   :  { %1049 = vmatprep.subr.bf16.mxu0 %v1103_v1  ;;  %v1118_v7 = vld [vmem:[#allocation8 + $0x40] sm:$0xff]   ;;  %v1120_v9 = vld [vmem:[#allocation8 + $0x48] sm:$0xff]   ;;  %v1122_v12 = vld [vmem:[#allocation8 + $0x50] sm:$0xff]  }
  0x4d   :  { %v1119_v8 = vld [vmem:[#allocation8] sm:$0xff]   ;;  %1079 = vmatprep.subr.bf16.mxu1 %v1118_v7  ;;  %v1121_v11 = vld [vmem:[#allocation8 + $0x8] sm:$0xff]   ;;  %v1109_v13 = vld [vmem:[#allocation6 + $0x38] sm:$0xff]  }
  0x4e   :  { %1087 = vmatpush3.bf16.msra.mxu1 %v1119_v8  ;;  %v1123_v14 = vld [vmem:[#allocation8 + $0x10] sm:$0xff]   ;;  %v1124_v15 = vld [vmem:[#allocation8 + $0x58] sm:$0xff]   ;;  %v1111_v17 = vld [vmem:[#allocation3 + $0x8] sm:$0xff]  }
  0x4f   :  { %1050 = vmatpush3.bf16.msra.mxu0 %v1103_v1  ;;  %1080 = vmatprep.subr.bf16.mxu1 %v1120_v9  ;;  %v1125_v16 = vld [vmem:[#allocation8 + $0x18] sm:$0xff]   ;;  %v1126_v18 = vld [vmem:[#allocation8 + $0x60] sm:$0xff]   ;;  %v1112_v19 = vld [vmem:[#allocation3 + $0x10] sm:$0xff]  }
  0x50   :  { %1051 = vmatprep.subr.bf16.mxu0 %v1104_v2  ;;  %v1127_v20 = vld [vmem:[#allocation8 + $0x20] sm:$0xff]   ;;  %v1128_v21 = vld [vmem:[#allocation8 + $0x68] sm:$0xff]   ;;  %v1113_v22 = vld [vmem:[#allocation3 + $0x18] sm:$0xff]  }
  0x51   :  { %v1129_v23 = vld [vmem:[#allocation8 + $0x28] sm:$0xff]   ;;  %v1114_v24 = vld [vmem:[#allocation3 + $0x20] sm:$0xff]   ;;  %v1130_v25 = vld [vmem:[#allocation8 + $0x70] sm:$0xff]  }
  0x52   :  { %1088 = vmatpush3.bf16.msra.mxu1 %v1121_v11  ;;  %v1115_v26 = vld [vmem:[#allocation3 + $0x28] sm:$0xff]   ;;  %v1116_v27 = vld [vmem:[#allocation3 + $0x30] sm:$0xff]   ;;  %v1117_v28 = vld [vmem:[#allocation3 + $0x38] sm:$0xff]  }
  0x53   :  { %1052 = vmatpush3.bf16.msra.mxu0 %v1104_v2  ;;  %1081 = vmatprep.subr.bf16.mxu1 %v1122_v12  ;;  %v1131_v29 = vld [vmem:[#allocation8 + $0x30] sm:$0xff]   ;;  %v1132_v30 = vld [vmem:[#allocation8 + $0x78] sm:$0xff]   ;;  %v1134_v37 = vld [vmem:[#allocation6] sm:$0xff]  }
  0x54   :  { %1053 = vmatprep.subr.bf16.mxu0 %v1105_v3  ;;  %v1133_v31 = vld [vmem:[#allocation8 + $0x38] sm:$0xff]   ;;  %v1135_v44 = vld [vmem:[#allocation6 + $0x10] sm:$0xff]   ;;  %v1140_v45 = vld [vmem:[#allocation6 + $0x8] sm:$0xff]  }
  0x55   :  { %v1136_v51 = vld [vmem:[#allocation6 + $0x18] sm:$0xff]   ;;  %v1137_v57 = vld [vmem:[#allocation6 + $0x20] sm:$0xff]   ;;  %v1138_v61 = vld [vmem:[#allocation6 + $0x28] sm:$0xff]  }
  0x56   :  { %1089 = vmatpush3.bf16.msra.mxu1 %v1123_v14  ;;  %v1139_v62 = vld [vmem:[#allocation6 + $0x30] sm:$0xff]   ;;  %v1141_v63 = vld [vmem:[#allocation6 + $0x38] sm:$0xff]   ;;  %v882_v2 = vld [vmem:[#allocation9] sm:$0xff]  }
  0x57   :  { %1054 = vmatpush3.bf16.msra.mxu0 %v1105_v3  ;;  %1082 = vmatprep.subr.bf16.mxu1 %v1124_v15 }
  0x58   :  { %1055 = vmatprep.subr.bf16.mxu0 %v1106_v5 }
  0x5a   :  { %1090 = vmatpush3.bf16.msra.mxu1 %v1125_v16 }
  0x5b   :  { %1056 = vmatpush3.bf16.msra.mxu0 %v1106_v5  ;;  %1083 = vmatprep.subr.bf16.mxu1 %v1126_v18  ;;  %v1374_v5 = vld [vmem:[%s1410_s3] ss:$0 sm:$0xff]  ;;  %s1266_s3 = smov [#allocation11]  }
  0x5c   :  { %1057 = vmatprep.subr.bf16.mxu0 %v1107_v6  ;;  %s792_s17 = sshll.u32 %s1266_s3, 4  ;;  %s793_s17 = int_to_ptr.vmem [resolvable:$true] %s792_s17 }
  0x5d   :  { %s1230_s18 = scalar_lea.vmem %s793_s17, 1024  ;;  %p1235_p5 = scmp.lt.s32.totalorder %s793_s17, %s793_s17 }
  0x5e   :  { %1091 = vmatpush3.bf16.msra.mxu1 %v1127_v20  ;;  %p1231_p4 = scmp.ne.s32.totalorder %s793_s17, %s1230_s18  ;;  %p1236_p6 = scmp.lt.s32.totalorder %s1230_s18, %s1230_s18 }
  0x5f   :  { %1058 = vmatpush3.bf16.msra.mxu0 %v1107_v6  ;;  %1084 = vmatprep.subr.bf16.mxu1 %v1128_v21 }
  0x60   :  { %1059 = vmatprep.subr.bf16.mxu0 %v1108_v10  ;;  %p1237_p7 = por %p1236_p6, %p1235_p5 }
  0x62   :  { %1092 = vmatpush3.bf16.msra.mxu1 %v1129_v23  ;;  %p1238_p8 = pnand %p1237_p7, %p1231_p4 }
  0x63   :  { %1060 = vmatpush3.bf16.msra.mxu0 %v1108_v10  ;;  %1085 = vmatprep.subr.bf16.mxu1 %v1130_v25 }
  0x64   :  { %1061 = vmatprep.subr.bf16.mxu0 %v1109_v13 }
  0x66   :  { %1093 = vmatpush3.bf16.msra.mxu1 %v1131_v29 }
  0x67   :  { %1062 = vmatpush3.bf16.msra.mxu0 %v1109_v13  ;;  %1086 = vmatprep.subr.bf16.mxu1 %v1132_v30 }
  0x68   :  { %983 = vmatprep.subr.bf16.mxu0 %v1118_v7 }
  0x6a   :  { %1064 = vmatmul.mubr.bf16.vlgmr.msra.gmra.mrb[0].mxu0 %v1111_v17  ;;  %1094 = vmatpush3.bf16.msra.mxu1 %v1133_v31 }
  0x6b   :  { %1067 = vmatprep.mubr.bf16.mxu0 %v1112_v19  ;;  %984 = vmatpush3.bf16.msra.mxu0 %v1119_v8  ;;  %v883_v8 = vunpack.c.l.bf16 %v882_v2 }
  0x6c   :  { %985 = vmatprep.subr.bf16.mxu0 %v1120_v9 }
  0x6f   :  { %986 = vmatpush3.bf16.msra.mxu0 %v1121_v11 }
  0x70   :  { %987 = vmatprep.subr.bf16.mxu0 %v1122_v12  ;;  %v884_v12 = vunpack.c.h.bf16 %v882_v2 }
  0x72   :  { %1068 = vmatmul.mubr.bf16.gmra.mrb[4].mxu0 %v1113_v22 }
  0x73   :  { %1071 = vmatprep.mubr.bf16.mxu0 %v1114_v24  ;;  %988 = vmatpush3.bf16.msra.mxu0 %v1123_v14  ;;  %v953_v24 = vld [vmem:[#allocation9 + $0x8] sm:$0xff]  }
  0x74   :  { %989 = vmatprep.subr.bf16.mxu0 %v1124_v15 }
  0x77   :  { %990 = vmatpush3.bf16.msra.mxu0 %v1125_v16 }
  0x78   :  { %991 = vmatprep.subr.bf16.mxu0 %v1126_v18 }
  0x7a   :  { %1072 = vmatmul.mubr.bf16.gmra.mrb[8].mxu0 %v1115_v26 }
  0x7b   :  { %1075 = vmatprep.mubr.bf16.mxu0 %v1116_v27  ;;  %992 = vmatpush3.bf16.msra.mxu0 %v1127_v20  ;;  %v954_v20 = vld [vmem:[#allocation9 + $0x10] sm:$0xff]  }
  0x7c   :  { %993 = vmatprep.subr.bf16.mxu0 %v1128_v21 }
  0x7f   :  { %994 = vmatpush3.bf16.msra.mxu0 %v1129_v23 }
  0x80   :  { %995 = vmatprep.subr.bf16.mxu0 %v1130_v25 }
  0x82   :  { %1076 = vmatmul.mubr.bf16.gmra.mrb[12].mxu0 %v1117_v28 }
  0x83   :  { %996 = vmatpush3.bf16.msra.mxu0 %v1131_v29 }
  0x84   :  { %997 = vmatprep.subr.bf16.mxu0 %v1132_v30 }
  0x87   :  { %998 = vmatpush3.bf16.msra.mxu0 %v1133_v31 }
 0x13d   :  { %v1065_v32 = vpop.f32.mrb[0].mxu0 }
 0x13e   :  { %v316_v33 = vpop.f32.mrb[1].mxu0 }
 0x13f   :  { %v1066_v34 = vpop.f32.mrb[2].mxu0 }
 0x140   :  { %v380_v35 = vpack.c.bf16 %v1066_v34, %v1065_v32  ;;  %v319_v36 = vpop.f32.mrb[3].mxu0  ;;  %v891_v32 = vunpack.c.l.bf16 %v954_v20 }
 0x141   :  { %v379_v38 = vpack.c.bf16 %v319_v36, %v316_v33  ;;  %v887_v33 = vunpack.c.l.bf16 %v953_v24 }
 0x143   :  { %578 = vmatprep.mubr.bf16.mxu0 %v379_v38 }
 0x144   :  { %579 = vmatmul.mubr.bf16.vlgmr.msra.gmra.mrb[16].mxu0 %v1134_v37  ;;  %v892_v37 = vunpack.c.h.bf16 %v954_v20 }
 0x145   :  { %v1069_v39 = vpop.f32.mrb[4].mxu0  ;;  %586 = vmatprep.mubr.bf16.mxu0 %v380_v35 }
 0x146   :  { %v332_v40 = vpop.f32.mrb[5].mxu0 }
 0x147   :  { %v1070_v41 = vpop.f32.mrb[6].mxu0 }
 0x148   :  { %v382_v42 = vpack.c.bf16 %v1070_v41, %v1069_v39  ;;  %v335_v43 = vpop.f32.mrb[7].mxu0 }
 0x149   :  { %v381_v46 = vpack.c.bf16 %v335_v43, %v332_v40  ;;  %v888_v40 = vunpack.c.h.bf16 %v953_v24 }
 0x14b   :  { %594 = vmatprep.mubr.bf16.mxu1 %v381_v46 }
 0x14c   :  { %595 = vmatmul.mubr.bf16.vlgmr.msra.gmra.mrb[0].mxu1 %v1135_v44  ;;  %587 = vmatmul.mubr.bf16.gmra.mrb[20].mxu0 %v1140_v45 }
 0x14d   :  { %602 = vmatprep.mubr.bf16.mxu1 %v382_v42  ;;  %v1073_v47 = vpop.f32.mrb[8].mxu0 }
 0x14e   :  { %v348_v48 = vpop.f32.mrb[9].mxu0 }
 0x14f   :  { %v1074_v49 = vpop.f32.mrb[10].mxu0 }
 0x150   :  { %v384_v50 = vpack.c.bf16 %v1074_v49, %v1073_v47  ;;  %v351_v52 = vpop.f32.mrb[11].mxu0 }
 0x151   :  { %v383_v53 = vpack.c.bf16 %v351_v52, %v348_v48 }
 0x154   :  { %603 = vmatmul.mubr.bf16.gmra.mrb[4].mxu1 %v1136_v51 }
 0x155   :  { %610 = vmatprep.mubr.bf16.mxu1 %v383_v53  ;;  %v1077_v54 = vpop.f32.mrb[12].mxu0 }
 0x156   :  { %v364_v55 = vpop.f32.mrb[13].mxu0 }
 0x157   :  { %v1078_v56 = vpop.f32.mrb[14].mxu0 }
 0x158   :  { %v386_v58 = vpack.c.bf16 %v1078_v56, %v1077_v54  ;;  %v367_v59 = vpop.f32.mrb[15].mxu0 }
 0x159   :  { %v385_v60 = vpack.c.bf16 %v367_v59, %v364_v55 }
 0x15c   :  { %611 = vmatmul.mubr.bf16.gmra.mrb[8].mxu1 %v1137_v57 }
 0x15d   :  { %618 = vmatprep.mubr.bf16.mxu1 %v384_v50  ;;  %v955_v50 = vld [vmem:[#allocation9 + $0x18] sm:$0xff]  }
 0x164   :  { %619 = vmatmul.mubr.bf16.gmra.mrb[12].mxu1 %v1138_v61 }
 0x165   :  { %626 = vmatprep.mubr.bf16.mxu1 %v385_v60  ;;  %v896_v60 = vunpack.c.h.bf16 %v955_v50 }
 0x16c   :  { %627 = vmatmul.mubr.bf16.gmra.mrb[16].mxu1 %v1139_v62 }
 0x16d   :  { %634 = vmatprep.mubr.bf16.mxu1 %v386_v58  ;;  %v895_v58 = vunpack.c.l.bf16 %v955_v50 }
 0x174   :  { %635 = vmatmul.mubr.bf16.gmra.mrb[20].mxu1 %v1141_v63 }
 0x217   :  { %v999_v0 = vpop.f32.mrb[16].mxu0 }
 0x218   :  { %v1000_v1 = vpop.f32.mrb[17].mxu0 }
 0x219   :  { %v1001_v3 = vadd.f32 %v1000_v1, %v999_v0  ;;  %v1002_v4 = vpop.f32.mrb[18].mxu0 }
 0x21a   :  { %v1003_v6 = vpop.f32.mrb[19].mxu0 }
 0x21b   :  { %v581_v7 = vadd.f32 %v1001_v3, %v1374_v5  ;;  %v1004_v9 = vadd.f32 %v1003_v6, %v1002_v4  ;;  %v956_v4 = vld [vmem:[#allocation9 + $0x20] sm:$0xff]  }
 0x21d   :  { %v643_v10 = vmax.f32 %v581_v7, 0.0  ;;  %v584_v11 = vadd.f32 %v1004_v9, %v1374_v5 }
 0x21f   :  { %v1011_v13 = vpop.f32.mrb[0].mxu1  ;;  %v691_v14 = vmul.f32 %v883_v8, %v643_v10  ;;  %v644_v15 = vmax.f32 %v584_v11, 0.0  ;;  %v1005_v16 = vpop.f32.mrb[20].mxu0  ;;  %v899_v11 = vunpack.c.l.bf16 %v956_v4 }
 0x220   :  { %v1012_v17 = vpop.f32.mrb[1].mxu1  ;;  %v1006_v18 = vpop.f32.mrb[21].mxu0 }
 0x221   :  { %v1013_v19 = vadd.f32 %v1012_v17, %v1011_v13  ;;  %v1014_v21 = vpop.f32.mrb[2].mxu1  ;;  %v692_v22 = vmul.f32 %v884_v12, %v644_v15  ;;  %v1007_v23 = vadd.f32 %v1006_v18, %v1005_v16  ;;  %v1008_v25 = vpop.f32.mrb[22].mxu0  ;;  %v900_v13 = vunpack.c.h.bf16 %v956_v4 }
 0x222   :  { %v1015_v26 = vpop.f32.mrb[3].mxu1  ;;  %v1009_v27 = vpop.f32.mrb[23].mxu0 }
 0x223   :  { %v597_v28 = vadd.f32 %v1013_v19, %v1374_v5  ;;  %v1016_v29 = vadd.f32 %v1015_v26, %v1014_v21  ;;  %v916_v30 = vpack.c.bf16 %v692_v22, %v691_v14  ;;  %v589_v31 = vadd.f32 %v1007_v23, %v1374_v5  ;;  %v957_v21 = vld [vmem:[#allocation9 + $0x28] sm:$0xff]  }
 0x224   :  { %v1010_v34 = vadd.f32 %v1009_v27, %v1008_v25  ;;  %v903_v27 = vunpack.c.l.bf16 %v957_v21 }
 0x225   :  { %v647_v35 = vmax.f32 %v597_v28, 0.0  ;;  %v600_v36 = vadd.f32 %v1016_v29, %v1374_v5  ;;  %917 = vst [vmem:[#allocation11] sm:$0xff] %v916_v30   ;;  %v645_v38 = vmax.f32 %v589_v31, 0.0  ;;  %v904_v29 = vunpack.c.h.bf16 %v957_v21 }
 0x226   :  { %v592_v39 = vadd.f32 %v1010_v34, %v1374_v5 }
 0x227   :  { %v648_v41 = vmax.f32 %v600_v36, 0.0  ;;  %v1017_v42 = vpop.f32.mrb[4].mxu1  ;;  %v693_v44 = vmul.f32 %v887_v33, %v645_v38  ;;  %v695_v46 = vmul.f32 %v891_v32, %v647_v35 }
 0x228   :  { %v1018_v43 = vpop.f32.mrb[5].mxu1  ;;  %v646_v45 = vmax.f32 %v592_v39, 0.0 }
 0x229   :  { %v696_v47 = vmul.f32 %v892_v37, %v648_v41  ;;  %v1019_v48 = vadd.f32 %v1018_v43, %v1017_v42  ;;  %v1020_v49 = vpop.f32.mrb[6].mxu1  ;;  %v958_v37 = vld [vmem:[#allocation9 + $0x30] sm:$0xff]  }
 0x22a   :  { %v1021_v51 = vpop.f32.mrb[7].mxu1  ;;  %v694_v52 = vmul.f32 %v888_v40, %v646_v45  ;;  %v907_v43 = vunpack.c.l.bf16 %v958_v37  ;;  %v908_v45 = vunpack.c.h.bf16 %v958_v37 }
 0x22b   :  { %v926_v53 = vpack.c.bf16 %v696_v47, %v695_v46  ;;  %v605_v54 = vadd.f32 %v1019_v48, %v1374_v5  ;;  %v1022_v55 = vadd.f32 %v1021_v51, %v1020_v49 }
 0x22c   :  { %v921_v56 = vpack.c.bf16 %v694_v52, %v693_v44 }
 0x22d   :  { %961 = vst [vmem:[#allocation11 + $0x10] sm:$0xff] %v926_v53   ;;  %v649_v57 = vmax.f32 %v605_v54, 0.0  ;;  %v608_v59 = vadd.f32 %v1022_v55, %v1374_v5  ;;  %v959_v53 = vld [vmem:[#allocation9 + $0x38] sm:$0xff]  }
 0x22e   :  { %960 = vst [vmem:[#allocation11 + $0x8] sm:$0xff] %v921_v56  }
 0x22f   :  { %v650_v61 = vmax.f32 %v608_v59, 0.0  ;;  %v1023_v62 = vpop.f32.mrb[8].mxu1  ;;  %v697_v0 = vmul.f32 %v895_v58, %v649_v57  ;;  %v911_v59 = vunpack.c.l.bf16 %v959_v53 }
 0x230   :  { %v1024_v63 = vpop.f32.mrb[9].mxu1 }
 0x231   :  { %v698_v1 = vmul.f32 %v896_v60, %v650_v61  ;;  %v1025_v2 = vadd.f32 %v1024_v63, %v1023_v62  ;;  %v1026_v3 = vpop.f32.mrb[10].mxu1  ;;  %v912_v61 = vunpack.c.h.bf16 %v959_v53 }
 0x232   :  { %v1027_v6 = vpop.f32.mrb[11].mxu1 }
 0x233   :  { %v931_v7 = vpack.c.bf16 %v698_v1, %v697_v0  ;;  %v613_v8 = vadd.f32 %v1025_v2, %v1374_v5  ;;  %v1028_v9 = vadd.f32 %v1027_v6, %v1026_v3 }
 0x235   :  { %962 = vst [vmem:[#allocation11 + $0x18] sm:$0xff] %v931_v7   ;;  %v651_v10 = vmax.f32 %v613_v8, 0.0  ;;  %v616_v12 = vadd.f32 %v1028_v9, %v1374_v5 }
 0x237   :  { %v652_v14 = vmax.f32 %v616_v12, 0.0  ;;  %v1029_v15 = vpop.f32.mrb[12].mxu1  ;;  %v699_v17 = vmul.f32 %v899_v11, %v651_v10 }
 0x238   :  { %v1030_v16 = vpop.f32.mrb[13].mxu1 }
 0x239   :  { %v700_v18 = vmul.f32 %v900_v13, %v652_v14  ;;  %v1031_v19 = vadd.f32 %v1030_v16, %v1029_v15  ;;  %v1032_v20 = vpop.f32.mrb[14].mxu1 }
 0x23a   :  { %v1033_v22 = vpop.f32.mrb[15].mxu1 }
 0x23b   :  { %v936_v23 = vpack.c.bf16 %v700_v18, %v699_v17  ;;  %v621_v24 = vadd.f32 %v1031_v19, %v1374_v5  ;;  %v1034_v25 = vadd.f32 %v1033_v22, %v1032_v20 }
 0x23d   :  { %963 = vst [vmem:[#allocation11 + $0x20] sm:$0xff] %v936_v23   ;;  %v653_v26 = vmax.f32 %v621_v24, 0.0  ;;  %v624_v28 = vadd.f32 %v1034_v25, %v1374_v5 }
 0x23f   :  { %v654_v30 = vmax.f32 %v624_v28, 0.0  ;;  %v1035_v31 = vpop.f32.mrb[16].mxu1  ;;  %v701_v33 = vmul.f32 %v903_v27, %v653_v26 }
 0x240   :  { %v1036_v32 = vpop.f32.mrb[17].mxu1 }
 0x241   :  { %v702_v34 = vmul.f32 %v904_v29, %v654_v30  ;;  %v1037_v35 = vadd.f32 %v1036_v32, %v1035_v31  ;;  %v1038_v36 = vpop.f32.mrb[18].mxu1 }
 0x242   :  { %v1039_v38 = vpop.f32.mrb[19].mxu1 }
 0x243   :  { %v941_v39 = vpack.c.bf16 %v702_v34, %v701_v33  ;;  %v629_v40 = vadd.f32 %v1037_v35, %v1374_v5  ;;  %v1040_v41 = vadd.f32 %v1039_v38, %v1038_v36 }
 0x245   :  { %964 = vst [vmem:[#allocation11 + $0x28] sm:$0xff] %v941_v39   ;;  %v655_v42 = vmax.f32 %v629_v40, 0.0  ;;  %v632_v44 = vadd.f32 %v1040_v41, %v1374_v5 }
 0x247   :  { %v656_v46 = vmax.f32 %v632_v44, 0.0  ;;  %v1041_v47 = vpop.f32.mrb[20].mxu1  ;;  %v703_v49 = vmul.f32 %v907_v43, %v655_v42 }
 0x248   :  { %v1042_v48 = vpop.f32.mrb[21].mxu1 }
 0x249   :  { %v704_v50 = vmul.f32 %v908_v45, %v656_v46  ;;  %v1043_v51 = vadd.f32 %v1042_v48, %v1041_v47  ;;  %v1044_v52 = vpop.f32.mrb[22].mxu1 }
 0x24a   :  { %v1045_v54 = vpop.f32.mrb[23].mxu1 }
 0x24b   :  { %v946_v55 = vpack.c.bf16 %v704_v50, %v703_v49  ;;  %v637_v56 = vadd.f32 %v1043_v51, %v1374_v5  ;;  %v1046_v57 = vadd.f32 %v1045_v54, %v1044_v52 }
 0x24d   :  { %965 = vst [vmem:[#allocation11 + $0x30] sm:$0xff] %v946_v55   ;;  %v657_v58 = vmax.f32 %v637_v56, 0.0  ;;  %v640_v60 = vadd.f32 %v1046_v57, %v1374_v5 }
 0x24f   :  { %v658_v62 = vmax.f32 %v640_v60, 0.0  ;;  %v705_v63 = vmul.f32 %v911_v59, %v657_v58 }
 0x251   :  { %v706_v0 = vmul.f32 %v912_v61, %v658_v62 }
 0x253   :  { %v951_v1 = vpack.c.bf16 %v706_v0, %v705_v63 }
 0x255   :  { %966 = vst [vmem:[#allocation11 + $0x38] sm:$0xff] %v951_v1  }
 0x256   :  { %1241 = shalt.err (!%p1238_p8)
}
 0x257   :  { %s1242_s22 = scalar_lea.hbm %s1412_s5, 1024 }
 0x258   :  { %p1243_p9 = scmp.ne.s32.totalorder %s1412_s5, %s1242_s22  ;;  %p1246_p10 = scmp.lt.u32.totalorder %s1242_s22, %s1412_s5 }
 0x25a   :  { %p1248_p11 = pnand %p1246_p10, %p1243_p9 }
 0x25c   :  { %1251 = shalt.err (!%p1248_p11)
}
 0x25d   :  { %798 = dma.vmem_to_hbm [thread:$0]  %s793_s17, 1024, %s1412_s5, [#allocation5], %s1262_s30, %s1262_s30, %s1263_s6  }
 0x25e   :  { %1258 = dma.done.wait [#allocation5], 1024  }
 0x25f   :  { %1259 = vsyncadd [#allocation5], 4294966272 }
 0x260   :  { %802 = vsyncpa [#allocation4], 1 }
 0x261   :  { %803 = vsyncpa [#allocation7], 1 }
 0x262   :  { %804 = vsyncpa [#allocation10], 1 }
 0x263   :  { %805 = vsyncpa [#allocation5], 1 }

</bundles_post_ra>
